<compile_context>
chip_gen: v6e
topology: v6e:2x2x1
jax: 0.10.0
libtpu: 0.0.40
codegen_flags: <defaults>
</compile_context>

<pallas_src>
import functools

import jax
import jax.numpy as jnp
from jax.experimental import pallas as pl
from jax.experimental.pallas import tpu as pltpu


# ----------------------------------------------------------------------------
# Kernel 1: fused q/k projection + score bmm + BatchNorm partial stats.
# One (batch) element per grid step.
# ----------------------------------------------------------------------------
def qk_attn_kernel(x_ref, w_ref, b_ref, attn_ref, ssum_ref, ssq_ref, *, embed_dim):
    x = x_ref[0]                                        # (HW, E) f32
    # Fused projection: one (E, 2E) bf16 matmul, f32 accumulation, f32 bias add.
    y = jnp.dot(x.astype(jnp.bfloat16), w_ref[...],
                preferred_element_type=jnp.float32) + b_ref[...]      # (HW, 2E)
    q = y[:, :embed_dim]                                # lane-tile aligned slice
    k = y[:, embed_dim:]
    # Scores: contract over E with a transposed contraction (no k.T materialized).
    s = jax.lax.dot_general(
        q.astype(jnp.bfloat16), k.astype(jnp.bfloat16),
        dimension_numbers=(((1,), (1,)), ((), ())),
        preferred_element_type=jnp.float32)             # (HW, HW) f32
    attn_ref[0] = s
    # Per-batch partials for BatchNorm (single channel => global statistics).
    ssum_ref[0] = jnp.sum(s, keepdims=True)
    ssq_ref[0] = jnp.sum(s * s, keepdims=True)
    # TODO(synk): for large HW, tile queries/keys here (flash-style) instead of
    #             materializing the full (HW, HW) block per step.


# ----------------------------------------------------------------------------
# Kernel 2: BatchNorm affine apply  y = x * scale + shift  (scale/shift folded
# from mean/var/gamma/beta in the wrapper), on a lane-dense 2-D slab.
# ----------------------------------------------------------------------------
def bnorm_kernel(a_ref, scale_ref, shift_ref, o_ref):
    o_ref[...] = a_ref[...] * scale_ref[...] + shift_ref[...]


# ----------------------------------------------------------------------------
# Wrapper
# ----------------------------------------------------------------------------
def self_attention(x, params, *, training=True, eps=1e-5):
    B, HW, E = x.shape
    f32 = jnp.float32
    bf16 = jnp.bfloat16

    # Pre-transpose + concatenate the q/k weights once (no in-kernel .T), and
    # pre-cast to bf16 so the MXU gets narrow operands; biases stay f32.
    w_qk = jnp.concatenate([params["wq"].T, params["wk"].T], axis=1).astype(bf16)   # (E, 2E)
    b_qk = jnp.concatenate([params["bq"], params["bk"]]).reshape(1, 2 * E).astype(f32)

    attn, ssum, ssq = pl.pallas_call(
        functools.partial(qk_attn_kernel, embed_dim=E),
        grid=(B,),
        in_specs=[
            pl.BlockSpec((1, HW, E), lambda b: (b, 0, 0)),     # x, streamed per batch
            pl.BlockSpec((E, 2 * E), lambda b: (0, 0)),        # fused weights, resident
            pl.BlockSpec((1, 2 * E), lambda b: (0, 0)),        # fused bias, resident
        ],
        out_specs=[
            pl.BlockSpec((1, HW, HW), lambda b: (b, 0, 0)),    # scores
            pl.BlockSpec((1, 1, 1), lambda b: (b, 0, 0)),      # per-batch sum
            pl.BlockSpec((1, 1, 1), lambda b: (b, 0, 0)),      # per-batch sum of squares
        ],
        out_shape=[
            jax.ShapeDtypeStruct((B, HW, HW), f32),
            jax.ShapeDtypeStruct((B, 1, 1), f32),
            jax.ShapeDtypeStruct((B, 1, 1), f32),
        ],
        compiler_params=pltpu.CompilerParams(
            dimension_semantics=("parallel",),
            vmem_limit_bytes=32 * 1024 * 1024,
        ),
    )(x, w_qk, b_qk)

    # --- BatchNorm2d(num_features=1) statistics -------------------------------
    count = B * HW * HW
    if training:
        mean = jnp.sum(ssum) / count
        var = jnp.sum(ssq) / count - mean * mean    # biased variance (as PyTorch uses
        var = jnp.maximum(var, 0.0)                 #  for the forward normalization)
    else:
        mean = params["bn_running_mean"][0]
        var = params["bn_running_var"][0]

    gamma = params["bn_weight"][0]
    beta = params["bn_bias"][0]
    scale = gamma * jax.lax.rsqrt(var + eps)
    shift = beta - mean * scale
    scale2d = jnp.reshape(scale, (1, 1)).astype(f32)
    shift2d = jnp.reshape(shift, (1, 1)).astype(f32)

    # --- Apply affine normalization on a lane-dense slab -----------------------
    total = B * HW * HW
    L = 128 if total % 128 == 0 else HW        # lane-dense last dim when possible
    R = total // L
    attn_flat = attn.reshape(R, L)             # contiguous reshape: free

    TM = R                                     # row tile: big, multiple of 8, >=2 steps
    for cand in (512, 256, 128, 64, 32, 16, 8):
        if R % cand == 0 and R // cand >= 2:
            TM = cand
            break

    out_flat = pl.pallas_call(
        bnorm_kernel,
        grid=(R // TM,),
        in_specs=[
            pl.BlockSpec((TM, L), lambda i: (i, 0)),
            pl.BlockSpec((1, 1), lambda i: (0, 0)),
            pl.BlockSpec((1, 1), lambda i: (0, 0)),
        ],
        out_specs=pl.BlockSpec((TM, L), lambda i: (i, 0)),
        out_shape=jax.ShapeDtypeStruct((R, L), f32),
        compiler_params=pltpu.CompilerParams(
            dimension_semantics=("parallel",),
            vmem_limit_bytes=32 * 1024 * 1024,
        ),
    )(attn_flat, scale2d, shift2d)

    return out_flat.reshape(B, 1, HW, HW)


# ----------------------------------------------------------------------------
# Pure-JAX reference (mirrors the PyTorch forward; bf16 matmul operands with
# f32 accumulation to match the kernel's MXU path).
# ----------------------------------------------------------------------------
def reference(x, p, *, training=True, eps=1e-5):
    f32, bf16 = jnp.float32, jnp.bfloat16
    B, HW, E = x.shape
    xb = x.astype(bf16)
    q = jnp.dot(xb, p["wq"].T.astype(bf16), preferred_element_type=f32) + p["bq"]
    k = jnp.dot(xb, p["wk"].T.astype(bf16), preferred_element_type=f32) + p["bk"]
    s = jnp.einsum("bqe,bke->bqk", q.astype(bf16), k.astype(bf16),
                   preferred_element_type=f32)
    if training:
        mean = jnp.mean(s)
        var = jnp.mean(s * s) - mean * mean
    else:
        mean = p["bn_running_mean"][0]
        var = p["bn_running_var"][0]
    y = (s - mean) * jax.lax.rsqrt(var + eps) * p["bn_weight"][0] + p["bn_bias"][0]
    return y.reshape(B, 1, HW, HW)


# ----------------------------------------------------------------------------
# Main
# ----------------------------------------------------------------------------
if __name__ == "__main__":
    B, HW, E = 2, 64, 128   # batch, tokens (8x8 feature map), embed_dim
    key = jax.random.PRNGKey(0)
    k1, k2, k3 = jax.random.split(key, 3)

    def kaiming_uniform(k, out_f, in_f):
        bound = (6.0 / in_f) ** 0.5   # nn.init.kaiming_uniform_ default gain
        return jax.random.uniform(k, (out_f, in_f), jnp.float32, -bound, bound)

    params = {
        "wq": kaiming_uniform(k1, E, E), "bq": jnp.zeros((E,), jnp.float32),
        "wk": kaiming_uniform(k2, E, E), "bk": jnp.zeros((E,), jnp.float32),
        "bn_weight": jnp.ones((1,), jnp.float32),
        "bn_bias": jnp.zeros((1,), jnp.float32),
        "bn_running_mean": jnp.zeros((1,), jnp.float32),
        "bn_running_var": jnp.ones((1,), jnp.float32),
    }

    x = jax.random.normal(k3, (B, HW, E), jnp.float32)

    out = self_attention(x, params, training=True)
    out = jax.block_until_ready(out)

    ref = reference(x, params, training=True)
    assert out.shape == (B, 1, HW, HW)
    assert jnp.allclose(out, ref, atol=2e-3, rtol=2e-3), (
        float(jnp.max(jnp.abs(out - ref))))

    print("KERNEL_OK")
</pallas_src>

<mosaic_0001>
module attributes {stable_mosaic.version = 11 : i64} {
  func.func @qk_attn_kernel(%arg0: i32, %arg1: memref<1x64x128xf32, #tpu.memory_space<vmem>>, %arg2: memref<128x256xbf16, #tpu.memory_space<vmem>>, %arg3: memref<1x256xf32, #tpu.memory_space<vmem>>, %arg4: memref<1x64x64xf32, #tpu.memory_space<vmem>>, %arg5: memref<1x1x1xf32, #tpu.memory_space<vmem>>, %arg6: memref<1x1x1xf32, #tpu.memory_space<vmem>>) attributes {dimension_semantics = [#tpu.dimension_semantics<parallel>], iteration_bounds = array<i64: 2>, scalar_prefetch = 0 : i64, scratch_operands = 0 : i64, tpu.core_type = #tpu.core_type<tc>, window_params = [{transform_indices = @transform_0, window_bounds = array<i64: 1, 64, 128>}, {pipeline_mode = #tpu.pipeline_mode<synchronous>, transform_indices = @transform_1, window_bounds = array<i64: 128, 256>}, {pipeline_mode = #tpu.pipeline_mode<synchronous>, transform_indices = @transform_2, window_bounds = array<i64: 1, 256>}, {transform_indices = @transform_3, window_bounds = array<i64: 1, 64, 64>}, {transform_indices = @transform_4, window_bounds = array<i64: 1, 1, 1>}, {transform_indices = @transform_5, window_bounds = array<i64: 1, 1, 1>}]} {
    %c0 = arith.constant 0 : index
    %c0_0 = arith.constant 0 : index
    %c0_1 = arith.constant 0 : index
    %0 = vector.load %arg1[%c0, %c0_0, %c0_1] : memref<1x64x128xf32, #tpu.memory_space<vmem>>, vector<1x64x128xf32>
    %1 = vector.shape_cast %0 : vector<1x64x128xf32> to vector<64x128xf32>
    %2 = arith.truncf %1 : vector<64x128xf32> to vector<64x128xbf16>
    %c0_2 = arith.constant 0 : index
    %c0_3 = arith.constant 0 : index
    %3 = vector.load %arg2[%c0_2, %c0_3] : memref<128x256xbf16, #tpu.memory_space<vmem>>, vector<128x256xbf16>
    %cst = arith.constant dense<0.000000e+00> : vector<64x256xf32>
    %4 = tpu.matmul %2, %3, %cst {dimension_numbers = #tpu.dot_dimension_numbers<[1], [0], [0], [1], [0, 0, 1, 1], [], []>} : vector<64x128xbf16>, vector<128x256xbf16>, vector<64x256xf32> -> vector<64x256xf32>
    %c0_4 = arith.constant 0 : index
    %c0_5 = arith.constant 0 : index
    %5 = vector.load %arg3[%c0_4, %c0_5] : memref<1x256xf32, #tpu.memory_space<vmem>>, vector<1x256xf32>
    %6 = vector.broadcast %5 : vector<1x256xf32> to vector<64x256xf32>
    %7 = arith.addf %4, %6 : vector<64x256xf32>
    %8 = vector.extract_strided_slice %7 {offsets = [0, 0], sizes = [64, 128], strides = [1, 1]} : vector<64x256xf32> to vector<64x128xf32>
    %9 = vector.extract_strided_slice %7 {offsets = [0, 128], sizes = [64, 128], strides = [1, 1]} : vector<64x256xf32> to vector<64x128xf32>
    %10 = arith.truncf %8 : vector<64x128xf32> to vector<64x128xbf16>
    %11 = arith.truncf %9 : vector<64x128xf32> to vector<64x128xbf16>
    %cst_6 = arith.constant dense<0.000000e+00> : vector<64x64xf32>
    %12 = tpu.matmul %10, %11, %cst_6 {dimension_numbers = #tpu.dot_dimension_numbers<[1], [1], [0], [0], [0, 0, 1, 0], [], []>} : vector<64x128xbf16>, vector<64x128xbf16>, vector<64x64xf32> -> vector<64x64xf32>
    %c0_7 = arith.constant 0 : index
    %c0_8 = arith.constant 0 : index
    %c0_9 = arith.constant 0 : index
    %13 = vector.load %arg4[%c0_7, %c0_8, %c0_9] : memref<1x64x64xf32, #tpu.memory_space<vmem>>, vector<1x64x64xf32>
    %14 = vector.shape_cast %13 : vector<1x64x64xf32> to vector<64x64xf32>
    %15 = vector.shape_cast %12 : vector<64x64xf32> to vector<1x64x64xf32>
    tpu.vector_store %arg4[%c0_7, %c0_8, %c0_9], %15 {strides = array<i32>} : memref<1x64x64xf32, #tpu.memory_space<vmem>>, vector<1x64x64xf32>,
    %16 = vector.shape_cast %12 : vector<64x64xf32> to vector<1x64x64xf32>
    %cst_10 = arith.constant dense<0.000000e+00> : vector<1xf32>
    %17 = vector.multi_reduction <add>, %16, %cst_10 [1, 2] : vector<1x64x64xf32> to vector<1xf32>
    %18 = vector.shape_cast %17 : vector<1xf32> to vector<1x1x1xf32>
    %19 = vector.extract %18[0, 0, 0] : f32 from vector<1x1x1xf32>
    %20 = vector.broadcast %19 : f32 to vector<1x1xf32>
    %c0_11 = arith.constant 0 : index
    %c0_12 = arith.constant 0 : index
    %c0_13 = arith.constant 0 : index
    %21 = vector.load %arg5[%c0_11, %c0_12, %c0_13] : memref<1x1x1xf32, #tpu.memory_space<vmem>>, vector<1x1x1xf32>
    %22 = vector.shape_cast %21 : vector<1x1x1xf32> to vector<1x1xf32>
    %23 = vector.shape_cast %20 : vector<1x1xf32> to vector<1x1x1xf32>
    tpu.vector_store %arg5[%c0_11, %c0_12, %c0_13], %23 {strides = array<i32>} : memref<1x1x1xf32, #tpu.memory_space<vmem>>, vector<1x1x1xf32>,
    %24 = arith.mulf %12, %12 : vector<64x64xf32>
    %25 = vector.shape_cast %24 : vector<64x64xf32> to vector<1x64x64xf32>
    %cst_14 = arith.constant dense<0.000000e+00> : vector<1xf32>
    %26 = vector.multi_reduction <add>, %25, %cst_14 [1, 2] : vector<1x64x64xf32> to vector<1xf32>
    %27 = vector.shape_cast %26 : vector<1xf32> to vector<1x1x1xf32>
    %28 = vector.extract %27[0, 0, 0] : f32 from vector<1x1x1xf32>
    %29 = vector.broadcast %28 : f32 to vector<1x1xf32>
    %c0_15 = arith.constant 0 : index
    %c0_16 = arith.constant 0 : index
    %c0_17 = arith.constant 0 : index
    %30 = vector.load %arg6[%c0_15, %c0_16, %c0_17] : memref<1x1x1xf32, #tpu.memory_space<vmem>>, vector<1x1x1xf32>
    %31 = vector.shape_cast %30 : vector<1x1x1xf32> to vector<1x1xf32>
    %32 = vector.shape_cast %29 : vector<1x1xf32> to vector<1x1x1xf32>
    tpu.vector_store %arg6[%c0_15, %c0_16, %c0_17], %32 {strides = array<i32>} : memref<1x1x1xf32, #tpu.memory_space<vmem>>, vector<1x1x1xf32>,
    return
  }
  func.func @transform_0(%arg0: i32) -> (i32, i32, i32) {
    %c0_i32 = arith.constant 0 : i32
    %c0_i32_0 = arith.constant 0 : i32
    %c0_i32_1 = arith.constant 0 : i32
    return %arg0, %c0_i32, %c0_i32_0 : i32, i32, i32
  }
  func.func @transform_1(%arg0: i32) -> (i32, i32) {
    %c0_i32 = arith.constant 0 : i32
    %c0_i32_0 = arith.constant 0 : i32
    %c0_i32_1 = arith.constant 0 : i32
    return %c0_i32, %c0_i32_0 : i32, i32
  }
  func.func @transform_2(%arg0: i32) -> (i32, i32) {
    %c0_i32 = arith.constant 0 : i32
    %c0_i32_0 = arith.constant 0 : i32
    %c0_i32_1 = arith.constant 0 : i32
    return %c0_i32, %c0_i32_0 : i32, i32
  }
  func.func @transform_3(%arg0: i32) -> (i32, i32, i32) {
    %c0_i32 = arith.constant 0 : i32
    %c0_i32_0 = arith.constant 0 : i32
    %c0_i32_1 = arith.constant 0 : i32
    return %arg0, %c0_i32, %c0_i32_0 : i32, i32, i32
  }
  func.func @transform_4(%arg0: i32) -> (i32, i32, i32) {
    %c0_i32 = arith.constant 0 : i32
    %c0_i32_0 = arith.constant 0 : i32
    %c0_i32_1 = arith.constant 0 : i32
    return %arg0, %c0_i32, %c0_i32_0 : i32, i32, i32
  }
  func.func @transform_5(%arg0: i32) -> (i32, i32, i32) {
    %c0_i32 = arith.constant 0 : i32
    %c0_i32_0 = arith.constant 0 : i32
    %c0_i32_1 = arith.constant 0 : i32
    return %arg0, %c0_i32, %c0_i32_0 : i32, i32, i32
  }
}

</mosaic_0001>

<bundles_post_ra>
// kernel: tpu_custom_call.1
= control target key start
LH: loop header
LB: loop body
LE: loop exit
PB: predicated region body
PF: predicated region fallthrough
CT: control target
= control target key end

     0   :  { %11 = vsyncpa [#allocation3], 0  ;;  %s1312_s0 = inlined_call_operand.hbm [shape: f32[2,64,128], index: 0, kind: input, shape index: {}]   ;;  %s1313_s1 = inlined_call_operand.hbm [shape: bf16[128,256], index: 1, kind: input, shape index: {}]   ;;  %s1314_s2 = inlined_call_operand.vmem [shape: f32[1,256], index: 2, kind: input, shape index: {}]   ;;  %s1315_s3 = inlined_call_operand.hbm [shape: f32[2,64,64], index: 3, kind: output, shape index: {0}]   ;;  %s1316_s4 = inlined_call_operand.vmem [shape: f32[2,1,1], index: 4, kind: output, shape index: {1}]   ;;  %s1317_s5 = inlined_call_operand.vmem [shape: f32[2,1,1], index: 5, kind: output, shape index: {2}]  }
   0x1   :  { %13 = vsyncpa [#allocation3 + $0x1], 0 }
   0x2   :  { %14 = vsyncpa [#allocation6], 0 }
   0x3   :  { %15 = vsyncpa [#allocation4], 0 }
   0x4   :  { %17 = vsyncpa [#allocation4 + $0x1], 0  ;;  %s1069_s18 = smov 0   ;;  %s1071_s19 = smov 0  }
   0x5   :  { %s1073_s20 = smov 0   ;;  %s1075_s21 = smov 0  }
   0x6 LB: > { %s1090_s22 = sadd.s32 4294967295, %s1029_s21   ;;  %s759_s23 = sadd.s32 4294967294, %s1029_s21   ;;  %s1029_s21 = sphi %s1075_s21, %s1341_s21   ;;  %s1025_s20 = sphi %s1073_s20, %s1340_s20   ;;  %s1021_s19 = sphi %s1071_s19, %s1339_s19   ;;  %s1017_s18 = sphi %s1069_s18, %s1338_s18  }
   0x7   : > { %p43_p0 = scmp.ne.s32.totalorder %s1021_s19, %s1017_s18  ;;  %p1318_p1 = scmp.eq.s32.totalorder %s1090_s22, 0 }
   0x8   : > { %p115_p3 = scmp.eq.s32.totalorder %s759_s23, 1  ;;  %p760_p5 = scmp.ge.s32.totalorder %s1029_s21, 1 }
   0x9   : > { %p1099_p4 = por %p1318_p1, %p43_p0  ;;  %p174_p7 = scmp.lt.s32.totalorder %s1029_s21, 3 }
   0xa   : > { %p1104_p6 = por %p115_p3, %p43_p0  ;;  %s1031_s27 = smov [#allocation5]  }
   0xb   : > { %s1323_s24 = scalar_select %p1099_p4, 1, 0 }
   0xc   : > { %s1324_s25 = scalar_select %p1104_p6, 1, 0 }
   0xd   : > { %p1109_p8 = pnand %p760_p5, %p174_p7  ;;  %s186_s28 = sshll.u32 %s1031_s27, 4  ;;  %s187_s28 = int_to_ptr.vmem [resolvable:$true] %s186_s28 }
   0xe   : > { %s1123_s30 = sadd.s32 1, %s1029_s21   ;;  %s30_s6 = sadd.s32 1, %s1025_s20 }
   0xf   : > { %s1325_s26 = scalar_select %p1109_p8, 1, 0 }
  0x10   : > { %p829_p9 = pneg %p1109_p8  ;;  %s27_s7 = ssub.s32 %s1029_s21, %s1123_s30 }
  0x11   : > { %s918_s8 = scalar_lea.vmem %s187_s28, 2048  ;;  %p926_p5 = scmp.lt.s32.totalorder %s187_s28, %s187_s28 }
  0x12   : > { %p1118_p11 = pnand %p829_p9, %p1318_p1  ;;  %p919_p13 = scmp.ne.s32.totalorder %s187_s28, %s918_s8 }
  0x13   : > { %p927_p7 = scmp.lt.s32.totalorder %s918_s8, %s918_s8 }
  0x14   : > { %p909_p12 = pneg %p1118_p11 }
  0x15   : > { %p928_p10 = por %p927_p7, %p926_p5 }
  0x16   : > { %p921_p0 = pnand %p919_p13, %p909_p12 }
  0x18   : > { %p922_p3 = pneg %p921_p0 }
  0x1a   : > { %p929_p2 = pnand %p928_p10, %p922_p3 }
  0x1c   : > { %932 = shalt.err (!%p929_p2)
}
  0x1d   : > { %s1319_s9 = smov 128   ;;  %s1033_s10 = smov 8  }
  0x1e   : > { %832 = dma.hbm_to_vmem [thread:$0]  (!%p1118_p11), %s1313_s1, 2048, %s187_s28, [#allocation6], %s1319_s9, %s1319_s9, %s1033_s10  }
  0x1f   : > { %p28_p2 = scmp.eq.s32.totalorder %s27_s7, 0  ;;  %p37_p9 = scmp.ne.s32.totalorder %s1025_s20, %s1021_s19 }
  0x20   : > { %p38_p10 = scmp.eq.s32.totalorder %s1029_s21, 0  ;;  %p842_p12 = scmp.lt.s32.totalorder %s1029_s21, 2 }
  0x21   : > { %s1143_s13 = scalar_select %p28_p2, %s1025_s20, %s30_s6  }
  0x22   : > { %p39_p13 = por %p38_p10, %p37_p9  ;;  %p1327_p0 = scmp.eq.s32.totalorder %s1090_s22, 1 }
  0x23   : > { %s203_s15 = sand.u32 1, %s1025_s20   ;;  %s791_s16 = sshll.u32 %s1029_s21, 10 }
  0x24   : > { %p1147_p3 = por %p1327_p0, %p37_p9  ;;  %s763_s17 = sshll.u32 %s203_s15, 6 }
  0x25   : > { %s1156_s29 = scalar_lea.hbm %s1312_s0, %s791_s16  ;;  %s207_s28 = scalar_lea.vmem [#allocation2], %s763_s17 }
  0x26   : > { %s1328_s14 = scalar_select %p1147_p3, 1, 0 }
  0x27   : > { %s214_s6 = sshll.u32 %s207_s28, 4  ;;  %p1158_p11 = pnand %p842_p12, %p39_p13  ;;  %s1162_s6 = int_to_ptr.vmem [resolvable:$true] %s214_s6 }
  0x28   : > { %s1164_s8 = scalar_lea.sflag [#allocation3], %s203_s15  ;;  %s933_s11 = scalar_lea.hbm %s1156_s29, 1024 }
  0x29   : > { %p934_p5 = scmp.ne.s32.totalorder %s1156_s29, %s933_s11  ;;  %p935_p7 = pneg %p1158_p11 }
  0x2a   : > { %s938_s17 = scalar_lea.hbm %s1312_s0, 2048  ;;  %p939_p10 = scmp.lt.s32.totalorder %s1156_s29, %s1312_s0 }
  0x2b   : > { %p936_p2 = pnand %p935_p7, %p934_p5  ;;  %p940_p12 = scmp.lt.s32.totalorder %s938_s17, %s933_s11 }
  0x2d   : > { %p937_p9 = pneg %p936_p2  ;;  %p941_p13 = por %p940_p12, %p939_p10 }
  0x2f   : > { %p942_p0 = pnand %p941_p13, %p937_p9 }
  0x31   : > { %945 = shalt.err (!%p942_p0)
}
  0x32   : > { %s946_s15 = scalar_lea.vmem %s1162_s6, 1024  ;;  %s1034_s28 = smov [#allocation2]  }
  0x33   : > { %p947_p1 = scmp.ne.s32.totalorder %s1162_s6, %s946_s15  ;;  %s951_s9 = sshll.u32 %s1034_s28, 4  ;;  %s952_s9 = int_to_ptr.vmem [resolvable:$false] %s951_s9 }
  0x34   : > { %s953_s12 = scalar_lea.vmem %s952_s9, 2048  ;;  %p954_p2 = scmp.lt.s32.totalorder %s1162_s6, %s952_s9 }
  0x35   : > { %p949_p6 = pnand %p947_p1, %p935_p7  ;;  %p955_p3 = scmp.lt.s32.totalorder %s953_s12, %s946_s15 }
  0x37   : > { %p950_p5 = pneg %p949_p6  ;;  %p956_p4 = por %p955_p3, %p954_p2 }
  0x39   : > { %p957_p8 = pnand %p956_p4, %p950_p5 }
  0x3b   : > { %960 = shalt.err (!%p957_p8)
}
  0x3c   : > { %s1330_s11 = smov 128   ;;  %p1331_p1 = scmp.ne.s32.totalorder %s1325_s26, 0 }
  0x3d   : > { %836 = dma.hbm_to_vmem [thread:$0]  (!%p1158_p11), %s1156_s29, 1024, %s1162_s6, %s1164_s8, %s1330_s11, %s1330_s11, %s1033_s10  }
  0x3e   : > { %226 = sbr.rel (%p1331_p1) target bundleno = 783 (0x30f), region = 32  ;;  %s1191_s16 = sand.u32 (!%p1331_p1), 1, %s1021_s19  }
  0x3f   : > { %s767_s9 = sshll.u32 (!%p1331_p1), %s1191_s16, 6  ;;  %s229_s17 = scalar_lea.sflag (!%p1331_p1), [#allocation3], %s1191_s16 }
  0x40   : > { %s1197_s7 = scalar_lea.vmem (!%p1331_p1), [#allocation2], %s767_s9  ;;  %p1332_p4 = scmp.ne.s32.totalorder (!%p1331_p1), %s1323_s24, 0 }
  0x43   : > { %1004 = dma.done.wait (%p1332_p4), %s229_s17, 1024  }
  0x44   : > { %1006 = vsyncadd (%p1332_p4), %s229_s17, 4294966272  ;;  %p1333_p6 = scmp.eq.s32.totalorder %s1090_s22, 0 }
  0x46   : > { %1008 = dma.done.wait (%p1333_p6), [#allocation6], 2048   ;;  %p1334_p8 = pmov %p1333_p6 }
  0x47   : > { %v1035_v0 = vmov 0   ;;  %v883_v1 = vld [vmem:[#allocation5 + $0x74] ss:$8 sps:$4 sm:$0xff]   ;;  %v885_v2 = vld [vmem:[#allocation5 + $0x70] ss:$8 sps:$4 sm:$0xff]   ;;  %v276_v17 = vld [vmem:[%s1197_s7] sm:$0xff]  ;;  %v306_v29 = vlaneseq }
  0x48   : > { %1010 = vsyncadd (%p1334_p8), [#allocation6], 4294965248  ;;  %428 = vmatprep.mubr.bf16.mxu0 %v1035_v0  ;;  %396 = vmatprep.subr.bf16.mxu0 %v883_v1  ;;  %v886_v3 = vld [vmem:[#allocation5 + $0x64] ss:$8 sps:$4 sm:$0xff]   ;;  %v888_v4 = vld [vmem:[#allocation5 + $0x60] ss:$8 sps:$4 sm:$0xff]  }
  0x49   : > { %397 = vmatpush1.bf16.msra.mxu0 %v885_v2  ;;  %v889_v5 = vld [vmem:[#allocation5 + $0x54] ss:$8 sps:$4 sm:$0xff]   ;;  %v891_v6 = vld [vmem:[#allocation5 + $0x50] ss:$8 sps:$4 sm:$0xff]   ;;  %v892_v7 = vld [vmem:[#allocation5 + $0x44] ss:$8 sps:$4 sm:$0xff]  }
  0x4a   : > { %398 = vmatprep.subr.bf16.mxu0 %v886_v3  ;;  %v894_v8 = vld [vmem:[#allocation5 + $0x40] ss:$8 sps:$4 sm:$0xff]   ;;  %v895_v9 = vld [vmem:[#allocation5 + $0x34] ss:$8 sps:$4 sm:$0xff]   ;;  %v897_v10 = vld [vmem:[#allocation5 + $0x30] ss:$8 sps:$4 sm:$0xff]  }
  0x4b   : > { %v898_v11 = vld [vmem:[#allocation5 + $0x24] ss:$8 sps:$4 sm:$0xff]   ;;  %v900_v12 = vld [vmem:[#allocation5 + $0x20] ss:$8 sps:$4 sm:$0xff]   ;;  %v901_v13 = vld [vmem:[#allocation5 + $0x14] ss:$8 sps:$4 sm:$0xff]  }
  0x4c   : > { %v903_v14 = vld [vmem:[#allocation5 + $0x10] ss:$8 sps:$4 sm:$0xff]   ;;  %v904_v15 = vld [vmem:[#allocation5 + $0x4] ss:$8 sps:$4 sm:$0xff]   ;;  %v906_v16 = vld [vmem:[#allocation5] ss:$8 sps:$4 sm:$0xff]  }
  0x4d   : > { %399 = vmatpush1.bf16.msra.mxu0 %v888_v4  ;;  %v277_v18 = vld [vmem:[%s1197_s7 + $0x8] sm:$0xff]  ;;  %v278_v20 = vld [vmem:[%s1197_s7 + $0x10] sm:$0xff]  ;;  %v279_v21 = vld [vmem:[%s1197_s7 + $0x18] sm:$0xff]  ;;  %v307_v30 = vshrl.u32 %v306_v29, 7  ;;  %vm542_vm0 = vcmask 523264   ;;  %s1220_s10 = scalar_lea.vmem [#allocation7], %s767_s9 }
  0x4e   : > { %400 = vmatprep.subr.bf16.mxu0 %v889_v5  ;;  %v284_v19 = vpack.c.bf16 %v277_v18, %v276_v17  ;;  %v285_v22 = vpack.c.bf16 %v279_v21, %v278_v20  ;;  %v280_v23 = vld [vmem:[%s1197_s7 + $0x20] sm:$0xff]  ;;  %v281_v24 = vld [vmem:[%s1197_s7 + $0x28] sm:$0xff]  ;;  %v282_v26 = vld [vmem:[%s1197_s7 + $0x30] sm:$0xff]  ;;  %s632_s29 = sshll.u32 %s1220_s10, 4  ;;  %s792_s6 = sshll.u32 %s1090_s22, 10  ;;  %s1255_s29 = int_to_ptr.vmem [resolvable:$true] %s632_s29 }
  0x4f   : > { %v286_v25 = vpack.c.bf16 %v281_v24, %v280_v23  ;;  %v283_v27 = vld [vmem:[%s1197_s7 + $0x38] sm:$0xff]  ;;  %v308_v31 = vsub.s32 0, %v307_v30  ;;  %v304_v32 = vld [vmem:[%s1314_s2] sm:$0x3]  ;;  %v312_v50 = vsub.s32 1, %v307_v30  ;;  %s1261_s27 = scalar_lea.hbm %s1315_s3, %s792_s6  ;;  %s613_s15 = scalar_lea.sflag [#allocation4], %s1191_s16 }
  0x50   : > { %v287_v28 = vpack.c.bf16 %v283_v27, %v282_v26  ;;  %s961_s28 = scalar_lea.vmem %s1255_s29, 1024  ;;  %p1335_p11 = scmp.ne.s32.totalorder %s1328_s14, 0 }
  0x51   : > { %401 = vmatpush1.bf16.msra.mxu0 %v891_v6  ;;  %v309_v34 = vrot.slane %v304_v32, %v308_v31  ;;  %v313_v53 = vrot.slane %v304_v32, %v312_v50  ;;  %p962_p3 = scmp.ne.s32.totalorder %s1255_s29, %s961_s28  ;;  %s1036_s12 = smov [#allocation7]  }
  0x52   : > { %402 = vmatprep.subr.bf16.mxu0 %v892_v7  ;;  %s965_s11 = sshll.u32 %s1036_s12, 4  ;;  %s966_s11 = int_to_ptr.vmem [resolvable:$false] %s965_s11 }
  0x53   : > { %p963_p7 = pnand %p962_p3, %p1335_p11  ;;  %s967_s9 = scalar_lea.vmem %s966_s11, 2048 }
  0x54   : > { %p968_p10 = scmp.lt.s32.totalorder %s1255_s29, %s966_s11  ;;  %p969_p12 = scmp.lt.s32.totalorder %s967_s9, %s961_s28 }
  0x55   : > { %403 = vmatpush1.bf16.msra.mxu0 %v894_v8  ;;  %p964_p9 = pneg %p963_p7 }
  0x56   : > { %404 = vmatprep.subr.bf16.mxu0 %v895_v9  ;;  %p970_p13 = por %p969_p12, %p968_p10 }
  0x58   : > { %p971_p0 = pnand %p970_p13, %p964_p9 }
  0x59   : > { %405 = vmatpush1.bf16.msra.mxu0 %v897_v10 }
  0x5a   : > { %406 = vmatprep.subr.bf16.mxu0 %v898_v11 }
  0x5d   : > { %407 = vmatpush1.bf16.msra.mxu0 %v900_v12 }
  0x5e   : > { %408 = vmatprep.subr.bf16.mxu0 %v901_v13 }
  0x61   : > { %409 = vmatpush1.bf16.msra.mxu0 %v903_v14 }
  0x62   : > { %410 = vmatprep.subr.bf16.mxu0 %v904_v15 }
  0x65   : > { %411 = vmatpush1.bf16.msra.mxu0 %v906_v16 }
  0x68   : > { %429 = vmatmul.mubr.bf16.vlgmr.msra.gmra.mxu0 %v284_v19 }
  0x69   : > { %438 = vmatprep.mubr.bf16.mxu0 %v1035_v0 }
  0x70   : > { %439 = vmatmul.mubr.bf16.gmra.mxu0 %v285_v22 }
  0x71   : > { %448 = vmatprep.mubr.bf16.mxu0 %v1035_v0 }
  0x78   : > { %449 = vmatmul.mubr.bf16.gmra.mxu0 %v286_v25 }
  0x79   : > { %458 = vmatprep.mubr.bf16.mxu0 %v1035_v0 }
  0x80   : > { %459 = vmatmul.mubr.bf16.gmra.mxu0 %v287_v28 }
 0x128   : > { %v430_v33 = vpop.f32.mrf.mxu0 }
 0x129   : > { %v431_v37 = vadd.f32 %v430_v33, %v309_v34 }
 0x12a   : > { %v432_v35 = vpop.f32.mrf.mxu0 }
 0x12b   : > { %v433_v1 = vadd.f32 %v432_v35, %v313_v53 }
 0x12c   : > { %v434_v36 = vpop.f32.mrf.mxu0 }
 0x12d   : > { %v435_v38 = vadd.f32 %v434_v36, %v309_v34 }
 0x12e   : > { %v436_v39 = vpop.f32.mrf.mxu0 }
 0x12f   : > { %v469_v40 = vpack.c.bf16 %v435_v38, %v431_v37  ;;  %v437_v0 = vadd.f32 %v436_v39, %v313_v53 }
 0x130   : > { %v440_v41 = vpop.f32.mrf.mxu0 }
 0x131   : > { %809 = vmatprep.mubr.bf16.mxu1 %v469_v40  ;;  %v473_v2 = vpack.c.bf16 %v437_v0, %v433_v1  ;;  %v441_v5 = vadd.f32 %v440_v41, %v309_v34 }
 0x132   : > { %v442_v42 = vpop.f32.mrf.mxu0 }
 0x133   : > { %v443_v62 = vadd.f32 %v442_v42, %v313_v53 }
 0x134   : > { %v444_v43 = vpop.f32.mrf.mxu0 }
 0x135   : > { %v445_v3 = vadd.f32 %v444_v43, %v309_v34 }
 0x136   : > { %v446_v44 = vpop.f32.mrf.mxu0 }
 0x137   : > { %v447_v61 = vadd.f32 %v446_v44, %v313_v53  ;;  %v470_v7 = vpack.c.bf16 %v445_v3, %v441_v5 }
 0x138   : > { %v450_v45 = vpop.f32.mrf.mxu0 }
 0x139   : > { %v474_v63 = vpack.c.bf16 %v447_v61, %v443_v62  ;;  %v451_v6 = vadd.f32 %v450_v45, %v309_v34 }
 0x13a   : > { %v452_v46 = vpop.f32.mrf.mxu0 }
 0x13b   : > { %v453_v58 = vadd.f32 %v452_v46, %v313_v53 }
 0x13c   : > { %v454_v47 = vpop.f32.mrf.mxu0 }
 0x13d   : > { %v455_v4 = vadd.f32 %v454_v47, %v309_v34 }
 0x13e   : > { %v456_v48 = vpop.f32.mrf.mxu0 }
 0x13f   : > { %v457_v55 = vadd.f32 %v456_v48, %v313_v53  ;;  %v471_v8 = vpack.c.bf16 %v455_v4, %v451_v6 }
 0x140   : > { %v460_v49 = vpop.f32.mrf.mxu0 }
 0x141   : > { %v475_v60 = vpack.c.bf16 %v457_v55, %v453_v58  ;;  %v461_v10 = vadd.f32 %v460_v49, %v309_v34 }
 0x142   : > { %v462_v51 = vpop.f32.mrf.mxu0 }
 0x143   : > { %v463_v56 = vadd.f32 %v462_v51, %v313_v53 }
 0x144   : > { %v464_v52 = vpop.f32.mrf.mxu0 }
 0x145   : > { %v465_v9 = vadd.f32 %v464_v52, %v309_v34 }
 0x146   : > { %v466_v54 = vpop.f32.mrf.mxu0 }
 0x147   : > { %v467_v57 = vadd.f32 %v466_v54, %v313_v53  ;;  %v472_v11 = vpack.c.bf16 %v465_v9, %v461_v10 }
 0x149   : > { %v476_v59 = vpack.c.bf16 %v467_v57, %v463_v56 }
 0x14b   : > { %801 = vmatprep.subr.bf16.mxu1 %v476_v59 }
 0x14c   : > { %802 = vmatpush3.bf16.xpose.msra.mxu1 %v476_v59 }
 0x14d   : > { %803 = vmatprep.subr.bf16.mxu1 %v475_v60 }
 0x154   : > { %804 = vmatpush3.bf16.xpose.msra.mxu1 %v475_v60 }
 0x155   : > { %805 = vmatprep.subr.bf16.mxu1 %v474_v63 }
 0x15c   : > { %806 = vmatpush3.bf16.xpose.msra.mxu1 %v474_v63 }
 0x15d   : > { %807 = vmatprep.subr.bf16.mxu1 %v473_v2 }
 0x164   : > { %808 = vmatpush3.bf16.xpose.msra.mxu1 %v473_v2 }
 0x16b   : > { %810 = vmatmul.mubr.bf16.vlgmr.msra.gmra.mxu1 %v470_v7 }
 0x16c   : > { %813 = vmatprep.mubr.bf16.mxu1 %v471_v8 }
 0x173   : > { %814 = vmatmul.mubr.bf16.gmra.mxu1 %v472_v11 }
 0x22b   : > { %v811_v12 = vpop.f32.mrf.mxu1 }
 0x22c   : > { %545 = vst.msk [vmem:[%s1220_s10 + $0x10] sm:$0xff] %vm542_vm0, %v811_v12  ;;  %v580_v17 = vmul.f32 %v811_v12, %v811_v12  ;;  %v554_v23 = vsel %vm542_vm0, %v811_v12, 0.0 }
 0x22d   : > { %v511_v13 = vpop.f32.mrf.mxu1 }
 0x22e   : > { %543 = vst.msk [vmem:[%s1220_s10] sm:$0xff] %vm542_vm0, %v511_v13  ;;  %v578_v15 = vmul.f32 %v511_v13, %v511_v13  ;;  %v551_v18 = vsel %vm542_vm0, %v511_v13, 0.0  ;;  %v589_v30 = vsel %vm542_vm0, %v580_v17, 0.0 }
 0x22f   : > { %v812_v14 = vpop.f32.mrf.mxu1 }
 0x230   : > { %546 = vst.msk [vmem:[%s1220_s10 + $0x18] sm:$0xff] %vm542_vm0, %v812_v14  ;;  %v586_v24 = vsel %vm542_vm0, %v578_v15, 0.0  ;;  %v581_v25 = vmul.f32 %v812_v14, %v812_v14  ;;  %v556_v31 = vsel %vm542_vm0, %v812_v14, 0.0 }
 0x231   : > { %v514_v16 = vpop.f32.mrf.mxu1 }
 0x232   : > { %544 = vst.msk [vmem:[%s1220_s10 + $0x8] sm:$0xff] %vm542_vm0, %v514_v16  ;;  %v552_v19 = vsel %vm542_vm0, %v514_v16, 0.0  ;;  %v579_v20 = vmul.f32 %v514_v16, %v514_v16  ;;  %v591_v36 = vsel %vm542_vm0, %v581_v25, 0.0 }
 0x233   : > { %v553_v21 = vadd.f32 %v552_v19, %v551_v18  ;;  %v815_v22 = vpop.f32.mrf.mxu1 }
 0x234   : > { %v587_v26 = vsel %vm542_vm0, %v579_v20, 0.0  ;;  %549 = vst.msk [vmem:[%s1220_s10 + $0x30] sm:$0xff] %vm542_vm0, %v815_v22  ;;  %v584_v41 = vmul.f32 %v815_v22, %v815_v22  ;;  %v562_v48 = vsel %vm542_vm0, %v815_v22, 0.0 }
 0x235   : > { %v555_v27 = vadd.f32 %v554_v23, %v553_v21  ;;  %v588_v28 = vadd.f32 %v587_v26, %v586_v24  ;;  %v527_v29 = vpop.f32.mrf.mxu1 }
 0x236   : > { %547 = vst.msk [vmem:[%s1220_s10 + $0x20] sm:$0xff] %vm542_vm0, %v527_v29  ;;  %v582_v32 = vmul.f32 %v527_v29, %v527_v29  ;;  %v558_v37 = vsel %vm542_vm0, %v527_v29, 0.0  ;;  %v597_v53 = vsel %vm542_vm0, %v584_v41, 0.0 }
 0x237   : > { %v590_v33 = vadd.f32 %v589_v30, %v588_v28  ;;  %v557_v34 = vadd.f32 %v556_v31, %v555_v27  ;;  %v816_v35 = vpop.f32.mrf.mxu1 }
 0x238   : > { %550 = vst.msk [vmem:[%s1220_s10 + $0x38] sm:$0xff] %vm542_vm0, %v816_v35  ;;  %v593_v42 = vsel %vm542_vm0, %v582_v32, 0.0  ;;  %v585_v51 = vmul.f32 %v816_v35, %v816_v35  ;;  %v564_v52 = vsel %vm542_vm0, %v816_v35, 0.0 }
 0x239   : > { %v559_v38 = vadd.f32 %v558_v37, %v557_v34  ;;  %v592_v39 = vadd.f32 %v591_v36, %v590_v33  ;;  %v530_v40 = vpop.f32.mrf.mxu1 }
 0x23a   : > { %548 = vst.msk [vmem:[%s1220_s10 + $0x28] sm:$0xff] %vm542_vm0, %v530_v40  ;;  %v560_v43 = vsel %vm542_vm0, %v530_v40, 0.0  ;;  %v583_v44 = vmul.f32 %v530_v40, %v530_v40  ;;  %v599_v56 = vsel %vm542_vm0, %v585_v51, 0.0 }
 0x23b   : > { %v594_v45 = vadd.f32 %v593_v42, %v592_v39  ;;  %v561_v46 = vadd.f32 %v560_v43, %v559_v38 }
 0x23c   : > { %v595_v47 = vsel %vm542_vm0, %v583_v44, 0.0 }
 0x23d   : > { %v596_v49 = vadd.f32 %v595_v47, %v594_v45  ;;  %v563_v50 = vadd.f32 %v562_v48, %v561_v46 }
 0x23f   : > { %v565_v54 = vadd.f32 %v564_v52, %v563_v50  ;;  %v598_v55 = vadd.f32 %v597_v53, %v596_v49 }
 0x241   : > { %566 = vadd.xlane.f32.xlu0 %v565_v54  ;;  %v600_v57 = vadd.f32 %v599_v56, %v598_v55 }
 0x245   : > { %601 = vadd.xlane.f32.xlu0 %v600_v57 }
 0x246   : > { %974 = shalt.err (!%p971_p0)
}
 0x247   : > { %s975_s17 = scalar_lea.hbm %s1261_s27, 1024  ;;  %s979_s26 = scalar_lea.hbm %s1315_s3, 2048 }
 0x248   : > { %p976_p5 = scmp.ne.s32.totalorder %s1261_s27, %s975_s17  ;;  %p980_p4 = scmp.lt.s32.totalorder %s1261_s27, %s1315_s3 }
 0x249   : > { %p981_p6 = scmp.lt.s32.totalorder %s979_s26, %s975_s17 }
 0x24a   : > { %p977_p2 = pnand %p976_p5, %p1335_p11 }
 0x24b   : > { %p982_p8 = por %p981_p6, %p980_p4 }
 0x24c   : > { %p978_p1 = pneg %p977_p2 }
 0x24e   : > { %p983_p3 = pnand %p982_p8, %p978_p1 }
 0x250   : > { %986 = shalt.err (!%p983_p3)
}
 0x251   : > { %s1037_s8 = smov 128   ;;  %s1038_s23 = smov 8   ;;  %vm576_vm1 = vcmask 0  }
 0x252   : > { %827 = dma.vmem_to_hbm [thread:$0]  (%p1335_p11), %s1255_s29, 1024, %s1261_s27, %s613_s15, %s1037_s8, %s1037_s8, %s1038_s23  }
 0x253   : > { %p269_p7 = scmp.lt.s32.totalorder %s1090_s22, 1 }
 0x255   : > { %s1343_s22 = smov (!%p269_p7, %s1090_s22), 1 }
 0x256   : > { %s271_s29 = scalar_lea.vmem %s1316_s4, %s1343_s22  ;;  %s274_s12 = scalar_lea.vmem %s1317_s5, %s1343_s22 }
 0x2ca   : > { %v567_v58 = vpop.xlane.xlu0 %566 }
 0x2cb   : > { %v568_v59 = vrot.slane %v567_v58, 4 }
 0x2cd   : > { %v569_v60 = vadd.f32 %v568_v59, %v567_v58 }
 0x2ce   : > { %v602_v61 = vpop.xlane.xlu0 %601 }
 0x2cf   : > { %v570_v62 = vrot.slane %v569_v60, 2  ;;  %v603_v63 = vrot.slane %v602_v61, 4 }
 0x2d1   : > { %v604_v0 = vadd.f32 %v603_v63, %v602_v61  ;;  %v571_v1 = vadd.f32 %v570_v62, %v569_v60 }
 0x2d3   : > { %v605_v2 = vrot.slane %v604_v0, 2  ;;  %v572_v3 = vrot.slane %v571_v1, 1 }
 0x2d5   : > { %v606_v4 = vadd.f32 %v605_v2, %v604_v0  ;;  %v573_v5 = vadd.f32 %v572_v3, %v571_v1 }
 0x2d7   : > { %817 = vpush %v573_v5  ;;  %v607_v6 = vrot.slane %v606_v4, 1 }
 0x2d9   : > { %v608_v7 = vadd.f32 %v607_v6, %v606_v4 }
 0x2db   : > { %819 = vpush %v608_v7 }
 0x308   : > { %s818_s27 = spop %817 }
 0x309   : > { %v575_v8 = vstv %s818_s27 }
 0x30a   : > { %577 = vst.msk [vmem:[%s271_s29] sm:$0x1] %vm576_vm1, %v575_v8 }
 0x30c   : > { %s820_s11 = spop %819 }
 0x30d   : > { %v610_v9 = vstv %s820_s11 }
 0x30e   : > { %611 = vst.msk [vmem:[%s274_s12] sm:$0x1] %vm576_vm1, %v610_v9 }
 0x30f PF: > { %s653_s9 = sand.u32 1, %s1017_s18   ;;  %p1336_p11 = scmp.ne.s32.totalorder %s1324_s25, 0 }
 0x310   : > { %p1337_p9 = scmp.ge.s32.totalorder %s1029_s21, 2  ;;  %s654_s17 = scalar_lea.sflag [#allocation4], %s653_s9 }
 0x312   : > { %p838_p10 = pnand %p1337_p9, %p1336_p11 }
 0x314   : > { %p839_p12 = pneg %p838_p10 }
 0x316   : > { %1012 = dma.done.wait (%p839_p12), %s654_s17, 1024  }
 0x317   : > { %1014 = vsyncadd (%p839_p12), %s654_s17, 4294966272  ;;  %p20_p13 = scmp.ge.s32.totalorder %s1123_s30, 4   ;;  %s1338_s18 = smov %s1021_s19 }
 0x318   : > { %s1339_s19 = smov %s1025_s20  ;;  %s1340_s20 = smov %s1143_s13 }
 0x319   : > { %s1341_s21 = smov %s1123_s30  ;;  %22 = sbr.rel (!%p20_p13) target bundleno = 6 (0x6), region = 105 }
 0x31e   :  { %671 = vsyncpa [#allocation3], 1 }
 0x31f   :  { %673 = vsyncpa [#allocation3 + $0x1], 1 }
 0x320   :  { %674 = vsyncpa [#allocation6], 1 }
 0x321   :  { %675 = vsyncpa [#allocation4], 1 }
 0x322   :  { %677 = vsyncpa [#allocation4 + $0x1], 1 }

</bundles_post_ra>
